<compile_context>
chip_gen: v7x
topology: tpu7x:2x2x1
jax: 0.10.0
libtpu: 0.0.40
codegen_flags: <defaults>
</compile_context>

<pallas_src>
import jax
import jax.numpy as jnp
import numpy as np
from jax.experimental import pallas as pl
from jax.experimental.pallas import tpu as pltpu

LN_EPS = 1e-12     # BERT config.layer_norm_eps default
OUT_LANES = 128    # lane-dense per-block partial-sum slab


def _bce_with_logits(z, y):
    # torch.nn.BCEWithLogitsLoss(reduction='none'):
    #   max(z, 0) - z*y + log(1 + exp(-|z|))
    return jnp.maximum(z, 0.0) - z * y + jnp.log1p(jnp.exp(-jnp.abs(z)))


def erenet_kernel(
    bert_ref,       # (TB, S, H)   bf16
    mask_ref,       # (TB, S, 1)   f32
    sub_lbl_ref,    # (TB, S, 2)   bf16   subject labels (natural dims)
    obj_lbl_ref,    # (TB, S, 2C)  bf16   object labels  (natural dims)
    wcond_ref,      # (TB, 1, H)   f32    per-row CLN gamma (hoisted projection)
    bcond_ref,      # (TB, 1, H)   f32    per-row CLN beta
    wtop_ref,       # (H, Np)      bf16   [subW | 0-pad]
    wbot_ref,       # (H, Np)      bf16   [0 0 | poW | 0-pad]
    bias_ref,       # (1, Np)      f32    [subb | pob | 0-pad]
    out_ref,        # (1, 1, OUT_LANES) f32   lane0 = weighted BCE partial sum
):
    TB, S, H = bert_ref.shape
    two_c = obj_lbl_ref.shape[-1]
    rows = TB * S

    x_bf = bert_ref[...]                      # bf16 operand for the MXU
    x = x_bf.astype(jnp.float32)              # f32 only for LN statistics

    # --- ConditionalLayerNorm (per-row gamma/beta precomputed in wrapper) ---
    # NOTE: stats come from bf16-quantized activations (systematic vs f32 ref,
    # inside the loosened tolerance).
    mean = jnp.mean(x, axis=-1, keepdims=True)
    cen = x - mean
    var = jnp.mean(cen * cen, axis=-1, keepdims=True)
    normed = cen * jax.lax.rsqrt(var + LN_EPS)
    # produce ctx directly in bf16 -> no second full f32 activation tile lives
    ctx_bf = (normed * wcond_ref[...] + bcond_ref[...]).astype(jnp.bfloat16)

    # --- fused lane-padded head: collapse batch -> one tall-M 2-D dot each ---
    x2 = x_bf.reshape(rows, H)
    c2 = ctx_bf.reshape(rows, H)
    logits = (
        jnp.dot(x2, wtop_ref[...], preferred_element_type=jnp.float32)
        + jnp.dot(c2, wbot_ref[...], preferred_element_type=jnp.float32)
        + bias_ref[...]
    )                                          # (rows, Np) f32

    sub_lbl = sub_lbl_ref[...].reshape(rows, 2).astype(jnp.float32)
    obj_lbl = obj_lbl_ref[...].reshape(rows, two_c).astype(jnp.float32)

    # sub mean-over-2 == 0.5*sum ; po mean-over-2 summed over C == 0.5*sum(2C)
    bce_sub = _bce_with_logits(logits[:, :2], sub_lbl)
    bce_obj = _bce_with_logits(logits[:, 2:2 + two_c], obj_lbl)
    per_tok = 0.5 * (jnp.sum(bce_sub, axis=-1, keepdims=True)
                     + jnp.sum(bce_obj, axis=-1, keepdims=True))    # (rows, 1)

    m2 = mask_ref[...].reshape(rows, 1)
    num = jnp.sum(per_tok * m2)                # masked BCE numerator (scalar)

    lane = jax.lax.broadcasted_iota(jnp.int32, out_ref.shape, 2)
    out_ref[...] = jnp.where(lane == 0, num, 0.0)


def _pick_block_b(batch, seq, row_budget=1024):
    """Largest divisor of `batch` with block_b*seq <= row_budget and grid >= 2."""
    best = 1
    for d in range(1, batch + 1):
        if batch % d == 0 and d * seq <= row_budget and batch // d >= 2:
            best = d
    return best


def _default_vmem_limit():
    # Size the scoped VMEM limit to the chip: <= 3/4 of physical, capped 100MiB.
    # (v7x: 64 MiB phys -> 48 MiB; v5e/v6e: 128 MiB phys -> 96 MiB.)
    try:
        cap = pltpu.get_tpu_info().vmem_capacity_bytes
        return int(min(cap * 3 // 4, 100 * 1024 * 1024))
    except Exception:
        return 48 * 1024 * 1024


def erenet_forward_pallas(bert_encoder, mask, subject_ids, subject_labels,
                          object_labels, params, block_b=None,
                          row_budget=1024, vmem_limit_bytes=None):
    B, S, H = bert_encoder.shape
    C = object_labels.shape[2]
    two_c = 2 * C
    ncols = 2 + two_c
    Np = max(128, ((ncols + 127) // 128) * 128)   # lane-padded fused head width

    if block_b is None:
        block_b = _pick_block_b(B, S, row_budget)
    assert B % block_b == 0, "block_b must divide batch"
    TB = block_b
    nblocks = B // TB

    if vmem_limit_bytes is None:
        vmem_limit_bytes = _default_vmem_limit()

    # --- hoisted: subject gather + CLN gamma/beta projection (one good matmul) ---
    sub_start = jnp.take_along_axis(
        bert_encoder, subject_ids[:, 0][:, None, None], axis=1)[:, 0]   # (B, H)
    sub_end = jnp.take_along_axis(
        bert_encoder, subject_ids[:, 1][:, None, None], axis=1)[:, 0]   # (B, H)
    subject = jnp.concatenate([sub_start, sub_end], axis=1)             # (B, 2H)
    w_cond = (params["cln_w"] + subject @ params["Ww"]).reshape(B, 1, H)
    b_cond = (params["cln_b"] + subject @ params["Wb"]).reshape(B, 1, H)
    w_cond = w_cond.astype(jnp.float32)
    b_cond = b_cond.astype(jnp.float32)

    # --- fused lane-padded head weights / bias (tiny, constant across grid) ---
    wtop = jnp.pad(params["subW"], ((0, 0), (0, Np - 2))).astype(jnp.bfloat16)
    wbot = jnp.pad(params["poW"], ((0, 0), (2, Np - ncols))).astype(jnp.bfloat16)
    bias_f = jnp.pad(jnp.concatenate([params["subb"], params["pob"]], axis=1),
                     ((0, 0), (0, Np - ncols))).astype(jnp.float32)

    # --- labels at natural last dims, bf16 (exact for 0/1) -> minimal stream ---
    sub_lbl = subject_labels.astype(jnp.bfloat16)                        # (B,S,2)
    obj_lbl = object_labels.reshape(B, S, two_c).astype(jnp.bfloat16)    # (B,S,2C)

    mask3 = mask.reshape(B, S, 1).astype(jnp.float32)
    bert_bf = bert_encoder.astype(jnp.bfloat16)

    cost = pl.CostEstimate(
        flops=int(4 * B * S * H * Np + 6 * B * S * H),
        transcendentals=int(B * S * (ncols + 1)),
        bytes_accessed=int(B * S * H * 2 + B * S * 4 + B * S * ncols * 2
                           + 2 * B * H * 4 + 2 * H * Np * 2 + Np * 4
                           + nblocks * OUT_LANES * 4),
    )

    grid_spec = pltpu.PrefetchScalarGridSpec(
        num_scalar_prefetch=0,
        grid=(nblocks,),
        in_specs=[
            pl.BlockSpec((TB, S, H), lambda b: (b, 0, 0)),        # bert (bf16)
            pl.BlockSpec((TB, S, 1), lambda b: (b, 0, 0)),        # mask
            pl.BlockSpec((TB, S, 2), lambda b: (b, 0, 0)),        # subject labels
            pl.BlockSpec((TB, S, two_c), lambda b: (b, 0, 0)),    # object labels
            pl.BlockSpec((TB, 1, H), lambda b: (b, 0, 0)),        # CLN gamma
            pl.BlockSpec((TB, 1, H), lambda b: (b, 0, 0)),        # CLN beta
            pl.BlockSpec((H, Np), lambda b: (0, 0)),              # Wtop (constant)
            pl.BlockSpec((H, Np), lambda b: (0, 0)),              # Wbot (constant)
            pl.BlockSpec((1, Np), lambda b: (0, 0)),              # fused bias
        ],
        out_specs=pl.BlockSpec((1, 1, OUT_LANES), lambda b: (b, 0, 0)),
    )

    partial = pl.pallas_call(
        erenet_kernel,
        out_shape=jax.ShapeDtypeStruct((nblocks, 1, OUT_LANES), jnp.float32),
        grid_spec=grid_spec,
        compiler_params=pltpu.CompilerParams(
            dimension_semantics=("parallel",),   # batch blocks shard across TCs
            vmem_limit_bytes=vmem_limit_bytes),
        cost_estimate=cost,
    )(bert_bf, mask3, sub_lbl, obj_lbl, w_cond, b_cond, wtop, wbot, bias_f)

    numerator = jnp.sum(partial[:, 0, 0])
    denominator = jnp.sum(mask.astype(jnp.float32))
    return numerator / denominator


def erenet_forward_ref(bert_encoder, mask, subject_ids, subject_labels,
                       object_labels, params):
    """Pure-JAX f32 reference matching the PyTorch training-path forward."""
    B, S, H = bert_encoder.shape
    C = object_labels.shape[2]
    sub_start = jnp.take_along_axis(
        bert_encoder, subject_ids[:, 0][:, None, None], axis=1)[:, 0]       # (B, H)
    sub_end = jnp.take_along_axis(
        bert_encoder, subject_ids[:, 1][:, None, None], axis=1)[:, 0]       # (B, H)
    subject = jnp.concatenate([sub_start, sub_end], axis=1)                 # (B, 2H)

    w = params["cln_w"] + subject @ params["Ww"]
    bcond = params["cln_b"] + subject @ params["Wb"]
    mean = bert_encoder.mean(-1, keepdims=True)
    cen = bert_encoder - mean
    var = (cen ** 2).mean(-1, keepdims=True)
    normed = cen / jnp.sqrt(var + LN_EPS)
    ctx = normed * w[:, None, :] + bcond[:, None, :]

    sub_logits = bert_encoder @ params["subW"] + params["subb"]
    po_logits = (ctx @ params["poW"] + params["pob"]).reshape(B, S, C, 2)

    sub_loss = _bce_with_logits(sub_logits, subject_labels).mean(-1)        # (B, S)
    sub_loss = jnp.sum(sub_loss * mask) / jnp.sum(mask)
    po_loss = _bce_with_logits(po_logits, object_labels).mean(-1).sum(-1)   # (B, S)
    po_loss = jnp.sum(po_loss * mask) / jnp.sum(mask)
    return sub_loss + po_loss


if __name__ == "__main__":
    B, S, H, C, VOCAB = 2, 16, 32, 4, 30

    key = jax.random.PRNGKey(0)
    keys = jax.random.split(key, 10)

    # ----- deterministic synthetic parameters -----
    params = {
        "Ww": 0.05 * jax.random.normal(keys[0], (2 * H, H), jnp.float32),
        "Wb": 0.05 * jax.random.normal(keys[1], (2 * H, H), jnp.float32),
        "cln_w": jnp.ones((1, H), jnp.float32),
        "cln_b": jnp.zeros((1, H), jnp.float32),
        "subW": 0.1 * jax.random.normal(keys[2], (H, 2), jnp.float32),
        "subb": jnp.zeros((1, 2), jnp.float32),
        "poW": 0.1 * jax.random.normal(keys[3], (H, 2 * C), jnp.float32),
        "pob": jnp.zeros((1, 2 * C), jnp.float32),
    }
    emb_table = 0.5 * jax.random.normal(keys[4], (VOCAB, H), jnp.float32)

    # ----- deterministic synthetic inputs -----
    passage_ids = jax.random.randint(keys[5], (B, S), 1, VOCAB, dtype=jnp.int32)
    passage_ids = passage_ids.at[0, -3:].set(0).at[1, -5:].set(0)  # padding
    subject_ids = jax.random.randint(keys[6], (B, 2), 1, S - 1, dtype=jnp.int32)
    subject_labels = jax.random.bernoulli(keys[7], 0.2, (B, S, 2)).astype(jnp.float32)
    object_labels = jax.random.bernoulli(keys[8], 0.1, (B, S, C, 2)).astype(jnp.float32)

    # ----- glue: mask + stand-in encoder -----
    mask = (passage_ids != 0).astype(jnp.float32)
    # TODO(synk): the injected BERT encoder is external to ERENet; a deterministic
    # embedding lookup stands in for self.bert(...)[0] here.
    bert_encoder = emb_table[passage_ids]  # (B, S, H)

    loss_kernel = erenet_forward_pallas(
        bert_encoder, mask, subject_ids, subject_labels, object_labels, params)
    loss_kernel = jax.block_until_ready(loss_kernel)

    loss_ref = erenet_forward_ref(
        bert_encoder, mask, subject_ids, subject_labels, object_labels, params)
    loss_ref = jax.block_until_ready(loss_ref)

    # bf16 activations/weights in the kernel (f32 accumulation) -> loosened tolerance
    np.testing.assert_allclose(np.asarray(loss_kernel), np.asarray(loss_ref),
                               rtol=2e-2, atol=2e-2)
    print("KERNEL_OK")
</pallas_src>

<mosaic_0001>
module attributes {stable_mosaic.version = 11 : i64} {
  func.func @erenet_kernel(%arg0: i32, %arg1: memref<1x16x32xbf16, #tpu.memory_space<vmem>>, %arg2: memref<1x16x1xf32, #tpu.memory_space<vmem>>, %arg3: memref<1x16x2xbf16, #tpu.memory_space<vmem>>, %arg4: memref<1x16x8xbf16, #tpu.memory_space<vmem>>, %arg5: memref<1x1x32xf32, #tpu.memory_space<vmem>>, %arg6: memref<1x1x32xf32, #tpu.memory_space<vmem>>, %arg7: memref<32x128xbf16, #tpu.memory_space<vmem>>, %arg8: memref<32x128xbf16, #tpu.memory_space<vmem>>, %arg9: memref<1x128xf32, #tpu.memory_space<vmem>>, %arg10: memref<1x1x128xf32, #tpu.memory_space<vmem>>) attributes {dimension_semantics = [#tpu.dimension_semantics<parallel>], iteration_bounds = array<i64: 2>, scalar_prefetch = 0 : i64, scratch_operands = 0 : i64, tpu.core_type = #tpu.core_type<tc>, window_params = [{transform_indices = @transform_0, window_bounds = array<i64: 1, 16, 32>}, {transform_indices = @transform_1, window_bounds = array<i64: 1, 16, 1>}, {transform_indices = @transform_2, window_bounds = array<i64: 1, 16, 2>}, {transform_indices = @transform_3, window_bounds = array<i64: 1, 16, 8>}, {transform_indices = @transform_4, window_bounds = array<i64: 1, 1, 32>}, {transform_indices = @transform_5, window_bounds = array<i64: 1, 1, 32>}, {pipeline_mode = #tpu.pipeline_mode<synchronous>, transform_indices = @transform_6, window_bounds = array<i64: 32, 128>}, {pipeline_mode = #tpu.pipeline_mode<synchronous>, transform_indices = @transform_7, window_bounds = array<i64: 32, 128>}, {pipeline_mode = #tpu.pipeline_mode<synchronous>, transform_indices = @transform_8, window_bounds = array<i64: 1, 128>}, {transform_indices = @transform_9, window_bounds = array<i64: 1, 1, 128>}]} {
    %c0 = arith.constant 0 : index
    %c0_0 = arith.constant 0 : index
    %c0_1 = arith.constant 0 : index
    %0 = vector.load %arg1[%c0, %c0_0, %c0_1] : memref<1x16x32xbf16, #tpu.memory_space<vmem>>, vector<1x16x32xbf16>
    %1 = arith.extf %0 : vector<1x16x32xbf16> to vector<1x16x32xf32>
    %cst = arith.constant dense<0.000000e+00> : vector<1x16xf32>
    %2 = vector.multi_reduction <add>, %1, %cst [2] : vector<1x16x32xf32> to vector<1x16xf32>
    %3 = vector.shape_cast %2 : vector<1x16xf32> to vector<1x16x1xf32>
    %cst_2 = arith.constant 3.200000e+01 : f32
    %4 = vector.broadcast %cst_2 : f32 to vector<1x16x1xf32>
    %5 = arith.divf %3, %4 : vector<1x16x1xf32>
    %6 = vector.broadcast %5 : vector<1x16x1xf32> to vector<1x16x32xf32>
    %7 = arith.subf %1, %6 : vector<1x16x32xf32>
    %8 = arith.mulf %7, %7 : vector<1x16x32xf32>
    %cst_3 = arith.constant dense<0.000000e+00> : vector<1x16xf32>
    %9 = vector.multi_reduction <add>, %8, %cst_3 [2] : vector<1x16x32xf32> to vector<1x16xf32>
    %10 = vector.shape_cast %9 : vector<1x16xf32> to vector<1x16x1xf32>
    %cst_4 = arith.constant 3.200000e+01 : f32
    %11 = vector.broadcast %cst_4 : f32 to vector<1x16x1xf32>
    %12 = arith.divf %10, %11 : vector<1x16x1xf32>
    %cst_5 = arith.constant 9.99999996E-13 : f32
    %13 = vector.broadcast %cst_5 : f32 to vector<1x16x1xf32>
    %14 = arith.addf %12, %13 : vector<1x16x1xf32>
    %15 = math.rsqrt %14 : vector<1x16x1xf32>
    %16 = vector.broadcast %15 : vector<1x16x1xf32> to vector<1x16x32xf32>
    %17 = arith.mulf %7, %16 : vector<1x16x32xf32>
    %c0_6 = arith.constant 0 : index
    %c0_7 = arith.constant 0 : index
    %c0_8 = arith.constant 0 : index
    %18 = vector.load %arg5[%c0_6, %c0_7, %c0_8] : memref<1x1x32xf32, #tpu.memory_space<vmem>>, vector<1x1x32xf32>
    %19 = vector.broadcast %18 : vector<1x1x32xf32> to vector<1x16x32xf32>
    %20 = arith.mulf %17, %19 : vector<1x16x32xf32>
    %c0_9 = arith.constant 0 : index
    %c0_10 = arith.constant 0 : index
    %c0_11 = arith.constant 0 : index
    %21 = vector.load %arg6[%c0_9, %c0_10, %c0_11] : memref<1x1x32xf32, #tpu.memory_space<vmem>>, vector<1x1x32xf32>
    %22 = vector.broadcast %21 : vector<1x1x32xf32> to vector<1x16x32xf32>
    %23 = arith.addf %20, %22 : vector<1x16x32xf32>
    %24 = arith.truncf %23 : vector<1x16x32xf32> to vector<1x16x32xbf16>
    %25 = vector.shape_cast %0 : vector<1x16x32xbf16> to vector<16x32xbf16>
    %26 = vector.shape_cast %24 : vector<1x16x32xbf16> to vector<16x32xbf16>
    %c0_12 = arith.constant 0 : index
    %c0_13 = arith.constant 0 : index
    %27 = vector.load %arg7[%c0_12, %c0_13] : memref<32x128xbf16, #tpu.memory_space<vmem>>, vector<32x128xbf16>
    %cst_14 = arith.constant dense<0.000000e+00> : vector<16x128xf32>
    %28 = tpu.matmul %25, %27, %cst_14 {dimension_numbers = #tpu.dot_dimension_numbers<[1], [0], [0], [1], [0, 0, 1, 1], [], []>} : vector<16x32xbf16>, vector<32x128xbf16>, vector<16x128xf32> -> vector<16x128xf32>
    %c0_15 = arith.constant 0 : index
    %c0_16 = arith.constant 0 : index
    %29 = vector.load %arg8[%c0_15, %c0_16] : memref<32x128xbf16, #tpu.memory_space<vmem>>, vector<32x128xbf16>
    %cst_17 = arith.constant dense<0.000000e+00> : vector<16x128xf32>
    %30 = tpu.matmul %26, %29, %cst_17 {dimension_numbers = #tpu.dot_dimension_numbers<[1], [0], [0], [1], [0, 0, 1, 1], [], []>} : vector<16x32xbf16>, vector<32x128xbf16>, vector<16x128xf32> -> vector<16x128xf32>
    %31 = arith.addf %28, %30 : vector<16x128xf32>
    %c0_18 = arith.constant 0 : index
    %c0_19 = arith.constant 0 : index
    %32 = vector.load %arg9[%c0_18, %c0_19] : memref<1x128xf32, #tpu.memory_space<vmem>>, vector<1x128xf32>
    %33 = vector.broadcast %32 : vector<1x128xf32> to vector<16x128xf32>
    %34 = arith.addf %31, %33 : vector<16x128xf32>
    %c0_20 = arith.constant 0 : index
    %c0_21 = arith.constant 0 : index
    %c0_22 = arith.constant 0 : index
    %35 = vector.load %arg3[%c0_20, %c0_21, %c0_22] : memref<1x16x2xbf16, #tpu.memory_space<vmem>>, vector<1x16x2xbf16>
    %36 = vector.shape_cast %35 : vector<1x16x2xbf16> to vector<16x2xbf16>
    %37 = arith.extf %36 : vector<16x2xbf16> to vector<16x2xf32>
    %c0_23 = arith.constant 0 : index
    %c0_24 = arith.constant 0 : index
    %c0_25 = arith.constant 0 : index
    %38 = vector.load %arg4[%c0_23, %c0_24, %c0_25] : memref<1x16x8xbf16, #tpu.memory_space<vmem>>, vector<1x16x8xbf16>
    %39 = vector.shape_cast %38 : vector<1x16x8xbf16> to vector<16x8xbf16>
    %40 = arith.extf %39 : vector<16x8xbf16> to vector<16x8xf32>
    %41 = vector.extract_strided_slice %34 {offsets = [0, 0], sizes = [16, 2], strides = [1, 1]} : vector<16x128xf32> to vector<16x2xf32>
    %cst_26 = arith.constant 0.000000e+00 : f32
    %42 = vector.broadcast %cst_26 : f32 to vector<16x2xf32>
    %43 = arith.maximumf %41, %42 : vector<16x2xf32>
    %44 = arith.mulf %41, %37 : vector<16x2xf32>
    %45 = arith.subf %43, %44 : vector<16x2xf32>
    %46 = math.absf %41 : vector<16x2xf32>
    %cst_27 = arith.constant 0.000000e+00 : f32
    %47 = vector.broadcast %cst_27 : f32 to vector<16x2xf32>
    %48 = arith.subf %47, %46 : vector<16x2xf32>
    %49 = math.exp %48 : vector<16x2xf32>
    %50 = math.log1p %49 : vector<16x2xf32>
    %51 = arith.addf %45, %50 : vector<16x2xf32>
    %52 = vector.extract_strided_slice %34 {offsets = [0, 2], sizes = [16, 8], strides = [1, 1]} : vector<16x128xf32> to vector<16x8xf32>
    %cst_28 = arith.constant 0.000000e+00 : f32
    %53 = vector.broadcast %cst_28 : f32 to vector<16x8xf32>
    %54 = arith.maximumf %52, %53 : vector<16x8xf32>
    %55 = arith.mulf %52, %40 : vector<16x8xf32>
    %56 = arith.subf %54, %55 : vector<16x8xf32>
    %57 = math.absf %52 : vector<16x8xf32>
    %cst_29 = arith.constant 0.000000e+00 : f32
    %58 = vector.broadcast %cst_29 : f32 to vector<16x8xf32>
    %59 = arith.subf %58, %57 : vector<16x8xf32>
    %60 = math.exp %59 : vector<16x8xf32>
    %61 = math.log1p %60 : vector<16x8xf32>
    %62 = arith.addf %56, %61 : vector<16x8xf32>
    %cst_30 = arith.constant dense<0.000000e+00> : vector<16xf32>
    %63 = vector.multi_reduction <add>, %51, %cst_30 [1] : vector<16x2xf32> to vector<16xf32>
    %64 = vector.shape_cast %63 : vector<16xf32> to vector<16x1xf32>
    %cst_31 = arith.constant dense<0.000000e+00> : vector<16xf32>
    %65 = vector.multi_reduction <add>, %62, %cst_31 [1] : vector<16x8xf32> to vector<16xf32>
    %66 = vector.shape_cast %65 : vector<16xf32> to vector<16x1xf32>
    %67 = arith.addf %64, %66 : vector<16x1xf32>
    %cst_32 = arith.constant 5.000000e-01 : f32
    %68 = vector.broadcast %cst_32 : f32 to vector<16x1xf32>
    %69 = arith.mulf %68, %67 : vector<16x1xf32>
    %c0_33 = arith.constant 0 : index
    %c0_34 = arith.constant 0 : index
    %c0_35 = arith.constant 0 : index
    %70 = vector.load %arg2[%c0_33, %c0_34, %c0_35] : memref<1x16x1xf32, #tpu.memory_space<vmem>>, vector<1x16x1xf32>
    %71 = vector.shape_cast %70 : vector<1x16x1xf32> to vector<16x1xf32>
    %72 = arith.mulf %69, %71 : vector<16x1xf32>
    %73 = vector.shape_cast %72 : vector<16x1xf32> to vector<1x16x1xf32>
    %cst_36 = arith.constant dense<0.000000e+00> : vector<1xf32>
    %74 = vector.multi_reduction <add>, %73, %cst_36 [1, 2] : vector<1x16x1xf32> to vector<1xf32>
    %75 = vector.shape_cast %74 : vector<1xf32> to vector<1x1x1xf32>
    %76 = vector.extract %75[0, 0, 0] : f32 from vector<1x1x1xf32>
    %77 = tpu.iota {dimensions = array<i32: 2>} : vector<1x1x128xi32>
    %c0_i32 = arith.constant 0 : i32
    %78 = vector.broadcast %c0_i32 : i32 to vector<1x1x128xi32>
    %79 = arith.cmpi eq, %77, %78 : vector<1x1x128xi32>
    %cst_37 = arith.constant 0.000000e+00 : f32
    %80 = vector.broadcast %76 : f32 to vector<1x1x128xf32>
    %81 = vector.broadcast %cst_37 : f32 to vector<1x1x128xf32>
    %82 = arith.select %79, %80, %81 : vector<1x1x128xi1>, vector<1x1x128xf32>
    %c0_38 = arith.constant 0 : index
    %c0_39 = arith.constant 0 : index
    %c0_40 = arith.constant 0 : index
    %83 = vector.load %arg10[%c0_38, %c0_39, %c0_40] : memref<1x1x128xf32, #tpu.memory_space<vmem>>, vector<1x1x128xf32>
    tpu.vector_store %arg10[%c0_38, %c0_39, %c0_40], %82 {strides = array<i32>} : memref<1x1x128xf32, #tpu.memory_space<vmem>>, vector<1x1x128xf32>,
    return
  }
  func.func @transform_0(%arg0: i32) -> (i32, i32, i32) {
    %c0_i32 = arith.constant 0 : i32
    %c0_i32_0 = arith.constant 0 : i32
    %c0_i32_1 = arith.constant 0 : i32
    return %arg0, %c0_i32, %c0_i32_0 : i32, i32, i32
  }
  func.func @transform_1(%arg0: i32) -> (i32, i32, i32) {
    %c0_i32 = arith.constant 0 : i32
    %c0_i32_0 = arith.constant 0 : i32
    %c0_i32_1 = arith.constant 0 : i32
    return %arg0, %c0_i32, %c0_i32_0 : i32, i32, i32
  }
  func.func @transform_2(%arg0: i32) -> (i32, i32, i32) {
    %c0_i32 = arith.constant 0 : i32
    %c0_i32_0 = arith.constant 0 : i32
    %c0_i32_1 = arith.constant 0 : i32
    return %arg0, %c0_i32, %c0_i32_0 : i32, i32, i32
  }
  func.func @transform_3(%arg0: i32) -> (i32, i32, i32) {
    %c0_i32 = arith.constant 0 : i32
    %c0_i32_0 = arith.constant 0 : i32
    %c0_i32_1 = arith.constant 0 : i32
    return %arg0, %c0_i32, %c0_i32_0 : i32, i32, i32
  }
  func.func @transform_4(%arg0: i32) -> (i32, i32, i32) {
    %c0_i32 = arith.constant 0 : i32
    %c0_i32_0 = arith.constant 0 : i32
    %c0_i32_1 = arith.constant 0 : i32
    return %arg0, %c0_i32, %c0_i32_0 : i32, i32, i32
  }
  func.func @transform_5(%arg0: i32) -> (i32, i32, i32) {
    %c0_i32 = arith.constant 0 : i32
    %c0_i32_0 = arith.constant 0 : i32
    %c0_i32_1 = arith.constant 0 : i32
    return %arg0, %c0_i32, %c0_i32_0 : i32, i32, i32
  }
  func.func @transform_6(%arg0: i32) -> (i32, i32) {
    %c0_i32 = arith.constant 0 : i32
    %c0_i32_0 = arith.constant 0 : i32
    %c0_i32_1 = arith.constant 0 : i32
    return %c0_i32, %c0_i32_0 : i32, i32
  }
  func.func @transform_7(%arg0: i32) -> (i32, i32) {
    %c0_i32 = arith.constant 0 : i32
    %c0_i32_0 = arith.constant 0 : i32
    %c0_i32_1 = arith.constant 0 : i32
    return %c0_i32, %c0_i32_0 : i32, i32
  }
  func.func @transform_8(%arg0: i32) -> (i32, i32) {
    %c0_i32 = arith.constant 0 : i32
    %c0_i32_0 = arith.constant 0 : i32
    %c0_i32_1 = arith.constant 0 : i32
    return %c0_i32, %c0_i32_0 : i32, i32
  }
  func.func @transform_9(%arg0: i32) -> (i32, i32, i32) {
    %c0_i32 = arith.constant 0 : i32
    %c0_i32_0 = arith.constant 0 : i32
    %c0_i32_1 = arith.constant 0 : i32
    return %arg0, %c0_i32, %c0_i32_0 : i32, i32, i32
  }
}

</mosaic_0001>

<bundles_post_ra>
// kernel: tpu_custom_call.1
= control target key start
LH: loop header
LB: loop body
LE: loop exit
PB: predicated region body
PF: predicated region fallthrough
CT: control target
= control target key end

     0   :  { %14 = vsyncpa [#allocation3], 0  ;;  %s1224_s0 = inlined_call_operand.vmem [shape: bf16[2,16,32], index: 0, kind: input, shape index: {}]   ;;  %s1225_s1 = inlined_call_operand.vmem [shape: f32[2,16,1], index: 1, kind: input, shape index: {}]   ;;  %s1226_s2 = inlined_call_operand.vmem [shape: bf16[2,16,2], index: 2, kind: input, shape index: {}]   ;;  %s1227_s3 = inlined_call_operand.vmem [shape: bf16[2,16,8], index: 3, kind: input, shape index: {}]   ;;  %s1228_s4 = inlined_call_operand.vmem [shape: f32[2,1,32], index: 4, kind: input, shape index: {}]   ;;  %s1229_s5 = inlined_call_operand.vmem [shape: f32[2,1,32], index: 5, kind: input, shape index: {}]   ;;  %s1230_s6 = inlined_call_operand.vmem [shape: bf16[32,128], index: 6, kind: input, shape index: {}]   ;;  %s1231_s7 = inlined_call_operand.vmem [shape: bf16[32,128], index: 7, kind: input, shape index: {}]   ;;  %s1232_s8 = inlined_call_operand.vmem [shape: f32[1,128], index: 8, kind: input, shape index: {}]   ;;  %s1233_s9 = inlined_call_operand.hbm [shape: f32[2,1,128], index: 9, kind: output, shape index: {}]  }
   0x1   :  { %16 = vsyncpa [#allocation3 + $0x1], 0  ;;  %s1077_s30 = smov 0   ;;  %s1079_s10 = smov 0  }
   0x2   :  { %s1081_s11 = smov 0   ;;  %s1083_s12 = smov 0  }
   0x3 LB: > { %s1098_s13 = sadd.s32 4294967295, %s1020_s12   ;;  %s831_s14 = sadd.s32 4294967294, %s1020_s12   ;;  %s1020_s12 = sphi %s1083_s12, %s1239_s12   ;;  %s1016_s11 = sphi %s1081_s11, %s1238_s11   ;;  %s1012_s10 = sphi %s1079_s10, %s1237_s10   ;;  %s1008_s30 = sphi %s1077_s30, %s1236_s30  }
   0x4   : > { %s1102_s15 = sadd.s32 1, %s1020_s12   ;;  %s248_s16 = sadd.s32 1, %s1016_s11 }
   0x5   : > { %s245_s17 = ssub.s32 %s1020_s12, %s1102_s15  ;;  %p258_p0 = scmp.ne.s32.totalorder %s1016_s11, %s1012_s10 }
   0x6   : > { %p246_p1 = scmp.eq.s32.totalorder %s245_s17, 0  ;;  %p259_p2 = scmp.eq.s32.totalorder %s1098_s13, 1 }
   0x7   : > { %p264_p3 = scmp.ne.s32.totalorder %s1012_s10, %s1008_s30  ;;  %p265_p4 = scmp.eq.s32.totalorder %s831_s14, 1 }
   0x8   : > { %s1113_s18 = scalar_select %p246_p1, %s1016_s11, %s248_s16  }
   0x9   : > { %p1115_p5 = por %p259_p2, %p258_p0  ;;  %p1119_p6 = por %p265_p4, %p264_p3 }
   0xa   : > { %p834_p7 = scmp.ge.s32.totalorder %s1020_s12, 1  ;;  %p336_p8 = scmp.lt.s32.totalorder %s1020_s12, 3 }
   0xc   : > { %p337_p9 = pnand %p834_p7, %p336_p8 }
   0xd   : > { %p392_p10 = scmp.lt.s32.totalorder (!%p337_p9), %s1098_s13, 1  ;;  %vm423_vm0 = vcmask (!%p337_p9), 261120   ;;  %v941_v15 = vld [vmem:[%s1230_s6] sm:$0xff] (!%p337_p9)   ;;  %v1022_v16 = vmov (!%p337_p9), 0.0   ;;  %v943_v18 = vld [vmem:[%s1230_s6 + $0x8] sm:$0xff] (!%p337_p9)   ;;  %vm1023_vm1 = vmmov (!%p337_p9), 0  }
   0xe   : > { %340 = sbr.rel (%p337_p9) target bundleno = 1089 (0x441), region = 56  ;;  %882 = vmatprep.subr.bf16.mxu1 (!%p337_p9), %v1022_v16  ;;  %874 = vmatprep.subr.bf16.mxu0 (!%p337_p9), %v1022_v16  ;;  %v942_v17 = vld [vmem:[%s1231_s7] sm:$0xff] (!%p337_p9)   ;;  %v944_v19 = vld [vmem:[%s1231_s7 + $0x8] sm:$0xff] (!%p337_p9)   ;;  %s1024_s27 = smov (!%p337_p9), 2   ;;  %vm660_vm4 = vcmask (!%p337_p9), 15360   ;;  %vm675_vm5 = vcmask (!%p337_p9), 64512  }
   0xf   : > { %883 = vmatpush3.bf16.msra.mxu1 (!%p337_p9), %v941_v15  ;;  %875 = vmatpush3.bf16.msra.mxu0 (!%p337_p9), %v942_v17  ;;  %v852_v47 = vld [vmem:[%s1232_s8] ss:$0 sm:$0xff] (!%p337_p9)  ;;  %vm690_vm6 = vcmask (!%p337_p9), 7168  }
  0x10   : > { %884 = vmatprep.subr.bf16.mxu1 (!%p337_p9), %v1022_v16  ;;  %886 = vmatprep.mubr.msk.bf16.mxu1 (!%p337_p9), %vm1023_vm1, %v1022_v16 }
  0x11   : > { %876 = vmatprep.subr.bf16.mxu0 (!%p337_p9), %v1022_v16  ;;  %878 = vmatprep.mubr.msk.bf16.mxu0 (!%p337_p9), %vm1023_vm1, %v1022_v16 }
  0x13   : > { %885 = vmatpush3.bf16.msra.mxu1 (!%p337_p9), %v943_v18  ;;  %877 = vmatpush3.bf16.msra.mxu0 (!%p337_p9), %v944_v19 }
  0x15   : > { %s1127_s21 = scalar_select %p392_p10, %s1098_s13, 1 }
  0x17   : > { %s1130_s22 = sshll.u32 %s1127_s21, 3  ;;  %s414_s14 = scalar_lea.vmem %s1228_s4, %s1127_s21 }
  0x18   : > { %s396_s25 = scalar_lea.vmem %s1224_s0, %s1130_s22  ;;  %s411_s26 = scalar_lea.vmem %s1227_s3, %s1130_s22  ;;  %v843_v32 = vld [vmem:[%s414_s14] ss:$0 sm:$0xff] }
  0x19   : > { %v419_v0 = vld [vmem:[%s396_s25] sm:$0xff]   ;;  %s417_s23 = scalar_lea.vmem %s1229_s5, %s1127_s21  ;;  %s857_s29 = sshll.u32 %s1127_s21, 4 }
  0x1a   : > { %v421_v1 = vunpack.c.l.bf16 %v419_v0  ;;  %v422_v2 = vunpack.c.h.bf16 %v419_v0  ;;  %887 = vmatmul.mubr.msk.bf16.vlgmr.msra.gmra.mrb[0].mxu1 %vm423_vm0, %v419_v0  ;;  %v865_v20 = vld [vmem:[%s411_s26] sm:$0xff]   ;;  %s406_s26 = scalar_lea.vmem %s1226_s2, %s1130_s22  ;;  %s1025_s22 = smov 126  }
  0x1b   : > { %v866_v21 = vunpack.c.l.bf16 %v865_v20  ;;  %v867_v22 = vunpack.c.h.bf16 %v865_v20  ;;  %v844_v36 = vld [vmem:[%s417_s23] ss:$0 sm:$0xff]  ;;  %s401_s17 = scalar_lea.vmem %s1225_s1, %s857_s29  ;;  %s390_s21 = sand.u32 1, %s1012_s10  }
  0x1c   : > { %v424_v3 = vsel %vm423_vm0, %v421_v1, 0.0  ;;  %v427_v4 = vsel %vm423_vm0, %v422_v2, 0.0  ;;  %v861_v45 = vld [vmem:[%s406_s26] sm:$0xff]   ;;  %s853_s23 = sshll.u32 %s1098_s13, 4  ;;  %s391_s24 = scalar_lea.vmem [#allocation2], %s390_s21 }
  0x1d   : > { %425 = vadd.xlane.f32.xlu0 %v424_v3  ;;  %v935_v23 = vpack.i.bf16 %v867_v22, %v866_v21  ;;  %v862_v51 = vunpack.c.l.bf16 %v861_v45  ;;  %s722_s25 = sshll.u32 %s391_s24, 4  ;;  %s710_s29 = scalar_lea.sflag [#allocation3], %s390_s21  ;;  %s1184_s25 = int_to_ptr.vmem [resolvable:$true] %s722_s25 }
  0x1e   : > { %s958_s14 = scalar_lea.vmem %s1184_s25, 16  ;;  %s1026_s13 = smov [#allocation2]  }
  0x1f   : > { %p959_p11 = scmp.ne.s32.totalorder %s1184_s25, %s958_s14  ;;  %s962_s16 = sshll.u32 %s1026_s13, 4  ;;  %s963_s16 = int_to_ptr.vmem [resolvable:$false] %s962_s16 }
  0x20   : > { %p965_p0 = scmp.lt.s32.totalorder %s1184_s25, %s963_s16 }
  0x21   : > { %428 = vadd.xlane.f32.xlu0 %v427_v4  ;;  %p960_p12 = pnand %p959_p11, %p1115_p5 }
  0x23   : > { %p961_p13 = pneg %p960_p12 }
  0x37   : > { %936 = vrot.lane.b32.xlu0 %v935_v23, %s1024_s27 }
  0xaa   : > { %v426_v5 = vpop.xlane.xlu0 %425 }
  0xab   : > { %v431_v6 = vmul.f32 0.03125, %v426_v5 }
  0xad   : > { %v433_v7 = vsub.f32 %v421_v1, %v431_v6 }
  0xae   : > { %v429_v8 = vpop.xlane.xlu0 %428 }
  0xaf   : > { %v432_v9 = vmul.f32 0.03125, %v429_v8  ;;  %v435_v10 = vmul.f32 %v433_v7, %v433_v7 }
  0xb1   : > { %v434_v11 = vsub.f32 %v422_v2, %v432_v9  ;;  %v437_v12 = vsel %vm423_vm0, %v435_v10, 0.0  ;;  %v863_v9 = vunpack.c.h.bf16 %v861_v45  ;;  %v686_v45 = vld [vmem:[%s401_s17] sm:$0xff] }
  0xb2   : > { %438 = vadd.xlane.f32.xlu1 %v437_v12  ;;  %v937_v5 = vpop.permute.xlu0 %936 }
  0xb3   : > { %v436_v13 = vmul.f32 %v434_v11, %v434_v11 }
  0xb5   : > { %v440_v14 = vsel %vm423_vm0, %v436_v13, 0.0 }
  0xb6   : > { %441 = vadd.xlane.f32.xlu1 %v440_v14 }
  0xed   : > { %v588_v41 = vpop.f32.mrb[0].mxu1 }
  0xee   : > { %v888_v42 = vpop.f32.mrb[1].mxu1 }
  0xef   : > { %v591_v43 = vpop.f32.mrb[2].mxu1 }
  0xf0   : > { %v889_v44 = vpop.f32.mrb[3].mxu1 }
 0x13f   : > { %v439_v24 = vpop.xlane.xlu1 %438 }
 0x140   : > { %v443_v25 = vmul.f32 0.03125, %v439_v24 }
 0x142   : > { %v445_v26 = vadd.f32 1e-12, %v443_v25 }
 0x143   : > { %v442_v27 = vpop.xlane.xlu1 %441 }
 0x144   : > { %946 = vrsqrt.f32 %v445_v26  ;;  %v444_v28 = vmul.f32 0.03125, %v442_v27 }
 0x146   : > { %v446_v29 = vadd.f32 1e-12, %v444_v28 }
 0x148   : > { %948 = vrsqrt.f32 %v446_v29 }
 0x14e   : > { %v947_v30 = vpop.eup %946 }
 0x14f   : > { %v449_v31 = vmul.f32 %v947_v30, %v433_v7  ;;  %v938_v7 = vunpack.i.l.bf16 %v937_v5 }
 0x151   : > { %v458_v35 = vmul.f32 %v843_v32, %v449_v31 }
 0x152   : > { %v949_v33 = vpop.eup %948 }
 0x153   : > { %v450_v34 = vmul.f32 %v949_v33, %v434_v11  ;;  %v467_v38 = vadd.f32 %v844_v36, %v458_v35  ;;  %v939_v11 = vunpack.i.h.bf16 %v937_v5 }
 0x155   : > { %v459_v37 = vmul.f32 %v843_v32, %v450_v34 }
 0x157   : > { %v468_v39 = vadd.f32 %v844_v36, %v459_v37 }
 0x159   : > { %v469_v40 = vpack.c.bf16 %v468_v39, %v467_v38 }
 0x15b   : > { %879 = vmatmul.mubr.msk.bf16.vlgmr.msra.gmra.mrb[0].mxu0 %vm423_vm0, %v469_v40 }
 0x22e   : > { %v527_v46 = vpop.f32.mrb[0].mxu0 }
 0x22f   : > { %v589_v48 = vadd.f32 %v588_v41, %v527_v46  ;;  %v880_v49 = vpop.f32.mrb[1].mxu0 }
 0x230   : > { %v530_v50 = vpop.f32.mrb[2].mxu0 }
 0x231   : > { %v602_v52 = vadd.f32 %v852_v47, %v589_v48  ;;  %v592_v53 = vadd.f32 %v591_v43, %v530_v50  ;;  %v881_v54 = vpop.f32.mrb[3].mxu0  ;;  %v687_v48 = vld [vmem:[%s401_s17 + $0x8] sm:$0xff]  ;;  %s964_s17 = scalar_lea.vmem %s963_s16, 32 }
 0x232   : > { %p966_p1 = scmp.lt.s32.totalorder %s964_s17, %s958_s14 }
 0x233   : > { %v618_v55 = vand.u32 2147483647, %v602_v52  ;;  %v603_v56 = vadd.f32 %v852_v47, %v592_v53  ;;  %v612_v57 = vmax.f32 %v602_v52, 0.0  ;;  %v614_v58 = vmul.f32 %v862_v51, %v602_v52 }
 0x234   : > { %v654_v12 = vmul.f32 %v938_v7, %v602_v52  ;;  %p967_p2 = por %p966_p1, %p965_p0 }
 0x235   : > { %v620_v59 = vsub.f32 0.0, %v618_v55  ;;  %v619_v60 = vand.u32 2147483647, %v603_v56  ;;  %v616_v61 = vsub.f32 %v612_v57, %v614_v58  ;;  %v613_v16 = vmax.f32 %v603_v56, 0.0 }
 0x236   : > { %v615_v17 = vmul.f32 %v863_v9, %v603_v56  ;;  %v655_v22 = vmul.f32 %v939_v11, %v603_v56  ;;  %v656_v23 = vsub.f32 %v612_v57, %v654_v12  ;;  %p968_p3 = pnand %p967_p2, %p961_p13 }
 0x237   : > { %v622_v62 = vmul.f32 1.442695, %v620_v59  ;;  %v621_v63 = vsub.f32 0.0, %v619_v60 }
 0x238   : > { %v617_v28 = vsub.f32 %v613_v16, %v615_v17  ;;  %v657_v31 = vsub.f32 %v613_v16, %v655_v22 }
 0x239   : > { %950 = vpow2.f32 %v622_v62  ;;  %v624_v0 = vmul.f32 1.442695, %v621_v63  ;;  %v703_v62 = vlaneseq }
 0x23b   : > { %952 = vpow2.f32 %v624_v0  ;;  %v704_v63 = vand.u32 127, %v703_v62 }
 0x23d   : > { %vm705_vm7 = vcmp.eq.s32.totalorder %v704_v63, 0 }
 0x243   : > { %v951_v1 = vpop.eup %950 }
 0x244   : > { %v626_v2 = vadd.f32 1.0, %v951_v1  ;;  %v629_v6 = vmul.f32 -0.5, %v951_v1  ;;  %v632_v13 = vand.u32 2147483647, %v951_v1 }
 0x245   : > { %v953_v3 = vpop.eup %952 }
 0x246   : > { %954 = vlog2.f32 %v626_v2  ;;  %v635_v4 = vadd.f32 1.0, %v953_v3  ;;  %v638_v8 = vmul.f32 -0.5, %v953_v3  ;;  %v630_v10 = vadd.f32 1.0, %v629_v6 }
 0x247   : > { %v641_v18 = vand.u32 2147483647, %v953_v3  ;;  %vm633_vm2 = vcmp.lt.f32.partialorder %v632_v13, 0.0004427343 }
 0x248   : > { %956 = vlog2.f32 %v635_v4  ;;  %v639_v14 = vadd.f32 1.0, %v638_v8  ;;  %v631_v20 = vmul.f32 %v951_v1, %v630_v10 }
 0x249   : > { %vm642_vm3 = vcmp.lt.f32.partialorder %v641_v18, 0.0004427343 }
 0x24a   : > { %v640_v26 = vmul.f32 %v953_v3, %v639_v14 }
 0x250   : > { %v955_v15 = vpop.eup %954 }
 0x251   : > { %v628_v19 = vmul.f32 0.6931472, %v955_v15 }
 0x252   : > { %v957_v21 = vpop.eup %956 }
 0x253   : > { %v634_v24 = vsel %vm633_vm2, %v631_v20, %v628_v19  ;;  %v637_v25 = vmul.f32 0.6931472, %v957_v21 }
 0x254   : > { %v658_v27 = vadd.f32 %v656_v23, %v634_v24  ;;  %v644_v29 = vadd.f32 %v634_v24, %v616_v61 }
 0x255   : > { %v643_v30 = vsel %vm642_vm3, %v640_v26, %v637_v25 }
 0x256   : > { %669 = vrot.lane.b32.xlu1 %v658_v27, %s1025_s22  ;;  %v645_v32 = vadd.f32 %v643_v30, %v617_v28  ;;  %v659_v34 = vadd.f32 %v657_v31, %v643_v30  ;;  %v661_v35 = vsel %vm660_vm4, %v644_v29, 0.0 }
 0x258   : > { %v664_v33 = vsel %vm660_vm4, %v645_v32, 0.0 }
 0x259   : > { %665 = vadd.xlane.f32.xlu0 %v664_v33 }
 0x25a   : > { %671 = vrot.lane.b32.xlu1 %v659_v34, %s1025_s22  ;;  %s1182_s22 = scalar_lea.hbm %s1233_s9, %s853_s23 }
 0x27e   : > { %662 = vadd.xlane.f32.xlu1 %v661_v35 }
 0x2c8   : > { %v670_v36 = vpop.permute.xlu1 %669 }
 0x2c9   : > { %v676_v37 = vsel %vm675_vm5, %v670_v36, 0.0 }
 0x2ca   : > { %677 = vadd.xlane.f32.xlu0 %v676_v37 }
 0x2cc   : > { %v672_v38 = vpop.permute.xlu1 %671 }
 0x2cd   : > { %v679_v39 = vsel %vm675_vm5, %v672_v38, 0.0 }
 0x2ce   : > { %680 = vadd.xlane.f32.xlu0 %v679_v39 }
 0x2e6   : > { %v666_v40 = vpop.xlane.xlu0 %665 }
 0x30b   : > { %v663_v41 = vpop.xlane.xlu1 %662 }
 0x357   : > { %v678_v42 = vpop.xlane.xlu0 %677 }
 0x358   : > { %v682_v43 = vadd.f32 %v678_v42, %v663_v41 }
 0x35a   : > { %v684_v44 = vmul.f32 0.5, %v682_v43 }
 0x35b   : > { %v681_v46 = vpop.xlane.xlu0 %680 }
 0x35c   : > { %v683_v47 = vadd.f32 %v681_v46, %v666_v40  ;;  %v688_v49 = vmul.f32 %v686_v45, %v684_v44 }
 0x35e   : > { %v685_v50 = vmul.f32 0.5, %v683_v47  ;;  %v691_v52 = vsel %vm690_vm6, %v688_v49, 0.0 }
 0x360   : > { %v689_v51 = vmul.f32 %v687_v48, %v685_v50 }
 0x362   : > { %v692_v53 = vsel %vm690_vm6, %v689_v51, 0.0 }
 0x363   : > { %v693_v54 = vadd.f32 %v692_v53, %v691_v52 }
 0x365   : > { %694 = vadd.xlane.f32.xlu1 %v693_v54 }
 0x3f2   : > { %v695_v55 = vpop.xlane.xlu1 %694 }
 0x3f3   : > { %v696_v56 = vrot.slane %v695_v55, 4 }
 0x3f5   : > { %v697_v57 = vadd.f32 %v696_v56, %v695_v55 }
 0x3f7   : > { %v698_v58 = vrot.slane %v697_v57, 2 }
 0x3f9   : > { %v699_v59 = vadd.f32 %v698_v58, %v697_v57 }
 0x3fb   : > { %v700_v60 = vrot.slane %v699_v59, 1 }
 0x3fd   : > { %v701_v61 = vadd.f32 %v700_v60, %v699_v59 }
 0x3ff   : > { %890 = vpush %v701_v61 }
 0x430   : > { %s891_s26 = spop %890 }
 0x431   : > { %v706_v0 = vstv %s891_s26 }
 0x432   : > { %v707_v1 = vsel %vm705_vm7, %v706_v0, 0.0 }
 0x433   : > { %708 = vst [vmem:[%s391_s24] sm:$0x1] %v707_v1 }
 0x434   : > { %971 = shalt.err (!%p968_p3)
}
 0x435   : > { %s972_s21 = scalar_lea.hbm %s1182_s22, 16  ;;  %s976_s26 = scalar_lea.hbm %s1233_s9, 32 }
 0x436   : > { %p973_p4 = scmp.ne.s32.totalorder %s1182_s22, %s972_s21  ;;  %p977_p9 = scmp.lt.u32.totalorder %s1182_s22, %s1233_s9 }
 0x437   : > { %p978_p10 = scmp.lt.u32.totalorder %s976_s26, %s972_s21  ;;  %p980_p12 = scmp.lt.u32.totalorder %s972_s21, %s1182_s22 }
 0x438   : > { %p974_p7 = pnand %p973_p4, %p1115_p5 }
 0x439   : > { %p979_p11 = por %p978_p10, %p977_p9 }
 0x43a   : > { %p975_p8 = pneg %p974_p7 }
 0x43b   : > { %p981_p13 = por %p980_p12, %p979_p11 }
 0x43d   : > { %p982_p0 = pnand %p981_p13, %p975_p8 }
 0x43f   : > { %985 = shalt.err (!%p982_p0)
}
 0x440   : > { %892 = dma.vmem_to_hbm [thread:$0]  (%p1115_p5), %s1184_s25, 16, %s1182_s22, %s710_s29  }
 0x441 PF: > { %p898_p1 = scmp.ge.s32.totalorder %s1020_s12, 2  ;;  %s734_s14 = sand.u32 1, %s1008_s30  }
 0x442   : > { %s735_s13 = scalar_lea.sflag [#allocation3], %s734_s14 }
 0x443   : > { %p895_p2 = pnand %p898_p1, %p1119_p6 }
 0x445   : > { %1003 = dma.done.wait (!%p895_p2), %s735_s13, 16  }
 0x446   : > { %1005 = vsyncadd (!%p895_p2), %s735_s13, 4294967280  ;;  %p19_p3 = scmp.ge.s32.totalorder %s1102_s15, 4   ;;  %s1236_s30 = smov %s1012_s10 }
 0x447   : > { %s1237_s10 = smov %s1016_s11  ;;  %s1238_s11 = smov %s1113_s18 }
 0x448   : > { %s1239_s12 = smov %s1102_s15  ;;  %21 = sbr.rel (!%p19_p3) target bundleno = 3 (0x3), region = 106 }
 0x44f   :  { %739 = vsyncpa [#allocation3], 1 }
 0x450   :  { %741 = vsyncpa [#allocation3 + $0x1], 1 }

</bundles_post_ra>
